<compile_context>
chip_gen: v5e
topology: v5e:2x2
jax: 0.10.0
libtpu: 0.0.40
codegen_flags: <defaults>
</compile_context>

<pallas_src>
import math

import jax
import jax.numpy as jnp
from jax.experimental import pallas as pl
from jax.experimental.pallas import tpu as pltpu


def _round_up(x, m):
    return (x + m - 1) // m * m


# ----------------------------- Pallas kernel --------------------------------

def _gpc_forward_kernel(x_ref, zt_ref, baug_ref, nz_ref, sc_ref, out_ref):
    """Fused forward for one test-point tile:
         k     = exp(-0.5*sqdist(X, Z)/ls + log(amp))            (N, tm)
         bk_a  = B_aug @ k        (bf16 MXU, f32 accumulate)     (N_aug, tm)
         mu    = bk_a[N]          (grad row folded into B_aug)   (1, tm)
         var   = amp - sum_n k[n]*bk_a[n]                        (1, tm)
         pi    = mean_s sigmoid(mu + sqrt(var)*noise[s])         (1, tm)
       Results are packed as rows 0/1/2 of a lane-dense (8, tm) output block.
    """
    inv_half_ls = sc_ref[0]      # -0.5 / length_scale
    log_amp = sc_ref[1]          # log(amplitude_scale)
    amp = sc_ref[2]              # amplitude_scale

    X = x_ref[...]               # (N, D)   f32, grid-invariant resident
    Zt = zt_ref[...]             # (D, tm)  f32, streamed tile (x_test.T)

    Xsq = jnp.sum(X * X, axis=1, keepdims=True)                    # (N, 1)
    Zsq = jnp.sum(Zt * Zt, axis=0, keepdims=True)                  # (1, tm)
    # Keep the pairwise term f32: sqdist precision feeds the exponent.
    cross = jnp.dot(X, Zt, preferred_element_type=jnp.float32)     # (N, tm)
    sqdist = jnp.maximum((Zsq - 2.0 * cross) + Xsq, 0.0)
    k = jnp.exp(inv_half_ls * sqdist + log_amp)                    # (N, tm) f32

    # Dominant matmul in bf16 on the MXU, f32 accumulate.
    bk_aug = jnp.dot(baug_ref[...], k.astype(jnp.bfloat16),
                     preferred_element_type=jnp.float32)           # (N_aug, tm)

    n = X.shape[0]
    bk = bk_aug[:n, :]                                             # B @ k
    mu_row = bk_aug[n:n + 1, :]                                    # grad.T @ k
    var_row = jnp.maximum(amp - jnp.sum(k * bk, axis=0, keepdims=True), 0.0)

    z = mu_row + jnp.sqrt(var_row) * nz_ref[...]                   # (S, tm)
    sig = 0.5 * (jnp.tanh(0.5 * z) + 1.0)                          # 1 EUP op/elem
    pi_row = jnp.mean(sig, axis=0, keepdims=True)

    # Pack mu/var/pi into rows 0/1/2 of one (8, tm) block -> single unmasked
    # store + single output DMA per grid step.
    rows = jax.lax.broadcasted_iota(jnp.int32, out_ref.shape, 0)
    out_ref[...] = jnp.where(rows == 0, mu_row,
                             jnp.where(rows == 1, var_row,
                                       jnp.where(rows == 2, pi_row, 0.0)))


# ------------------------------- wrapper -------------------------------------

def binary_laplace_gpc_forward(x_test, X, B_aug, length_scale, amplitude_scale,
                               noise, max_tile_m=1024):
    """Equivalent of BinaryLaplaceGPC.forward(x_test) after fit() + prep."""
    N, D = X.shape
    N_aug = B_aug.shape[0]
    M = x_test.shape[0]
    S = noise.shape[0]

    # ---- generation-aware VMEM budget --------------------------------------
    try:
        vmem_cap = int(getattr(pltpu.get_tpu_info(), "vmem_capacity_bytes",
                               64 * 1024 * 1024))
    except Exception:
        vmem_cap = 64 * 1024 * 1024          # conservative (v7x-sized) fallback
    vmem_budget = (vmem_cap * 3) // 4        # ~25% headroom for Mosaic internals

    def vmem_estimate(tm):
        # Residents: X (f32) + B_aug (bf16); allow 2 buffers in case the
        # Buffered(1) path is unavailable.
        resident = 2 * (4 * N * D + 2 * N_aug * N)
        # Streamed, double-buffered tiles: Zt, noise, packed output.
        streamed = 2 * 4 * tm * (D + S + 8)
        # Live per-tile intermediates: cross/sqdist/k/(k*bk) f32, bk_aug f32,
        # bf16 copy of k, z/sig f32, output assembly.
        interm = 4 * tm * (4 * N + N_aug) + 2 * tm * N + 4 * tm * (2 * S + 8)
        return resident + streamed + interm + (2 << 20)

    # ---- lane-dense tiling of the test axis ---------------------------------
    M_pad0 = _round_up(M, 128)
    tile_m = max(128, _round_up(min(max_tile_m, M_pad0), 128))
    if M_pad0 >= 256:                        # keep >=2 grid steps for megacore
        tile_m = min(tile_m, _round_up(M_pad0 // 2, 128))
    while tile_m > 128 and vmem_estimate(tile_m) > vmem_budget:
        tile_m -= 128
    M_pad = _round_up(M_pad0, tile_m)
    grid = (M_pad // tile_m,)

    vmem_limit = int(min(vmem_budget,
                         max(2 * vmem_estimate(tile_m), 16 * 1024 * 1024)))

    xt_pad = jnp.zeros((M_pad, D), jnp.float32).at[:M].set(x_test)
    zt = xt_pad.T                                                   # (D, M_pad)
    nz_pad = jnp.zeros((S, M_pad), jnp.float32).at[:, :M].set(noise)
    scales = jnp.array([-0.5 / length_scale, math.log(amplitude_scale),
                        amplitude_scale], dtype=jnp.float32)

    def run(single_buffer):
        def resident_spec(shape):
            if single_buffer:
                return pl.BlockSpec(shape, lambda j: (0,) * len(shape),
                                    pipeline_mode=pl.Buffered(1))
            return pl.BlockSpec(shape, lambda j: (0,) * len(shape))

        return pl.pallas_call(
            _gpc_forward_kernel,
            grid=grid,
            in_specs=[
                resident_spec((N, D)),                               # X
                pl.BlockSpec((D, tile_m), lambda j: (0, j)),         # x_test.T tile
                resident_spec((N_aug, N)),                           # B_aug (bf16)
                pl.BlockSpec((S, tile_m), lambda j: (0, j)),         # noise tile
                pl.BlockSpec(memory_space=pltpu.MemorySpace.SMEM),   # scalars
            ],
            out_specs=pl.BlockSpec((8, tile_m), lambda j: (0, j)),
            out_shape=jax.ShapeDtypeStruct((8, M_pad), jnp.float32),
            compiler_params=pltpu.CompilerParams(
                dimension_semantics=("parallel",),
                vmem_limit_bytes=vmem_limit),
        )(X, zt, B_aug, nz_pad, scales)

    try:
        packed = jax.block_until_ready(run(single_buffer=True))
    except Exception:
        # TODO(synk): fallback if this jax build rejects pipeline_mode=
        # pl.Buffered(1) on grid-invariant blocks; default double-buffering is
        # functionally identical, just uses more VMEM.
        packed = run(single_buffer=False)

    mu = packed[0, :M].reshape(M, 1)    # torch: (M, 1)
    var = packed[1, :M]                 # torch: (M,)
    pi = packed[2, :M]                  # torch: (M,)
    return mu, var, pi


# ------------------ plain-JAX fit() / one-time prep (glue) -------------------

def _kernel_mat_ref(X, Z, ls, amp):
    Xsq = jnp.sum(X ** 2, axis=1, keepdims=True)
    Zsq = jnp.sum(Z ** 2, axis=1, keepdims=True)
    sqdist = Xsq + Zsq.T - 2.0 * X @ Z.T
    return amp * jnp.exp(-0.5 * sqdist / ls)


def fit_laplace(X, y, ls, amp, eps=1e-3, max_iter=100):
    """Newton iterations of GPML Algorithm 3.1 (same math as module.fit()).
    sqrt_W is kept as its diagonal (N,1); solves use the Cholesky factor.
    NOTE: the float() convergence check syncs to host once per Newton step;
    this is fit-time only and not part of the forward path."""
    N = X.shape[0]
    f = jnp.zeros_like(y)
    K = _kernel_mat_ref(X, X, ls, amp)
    I = jnp.eye(N, dtype=jnp.float32)
    sw = jnp.ones((N, 1), jnp.float32)
    L = I
    for _ in range(max_iter):
        pi = jax.nn.sigmoid(f)
        w = pi * (1.0 - pi)                         # diag(W) = -Hessian diag
        sw = jnp.sqrt(w)                            # diag(sqrt_W), (N,1)
        L = jnp.linalg.cholesky(I + sw * K * sw.T)  # I + sqrt_W K sqrt_W
        grad = y - pi
        b = w * f + grad
        c = sw * (K @ b)
        a = b - sw * jax.scipy.linalg.solve_triangular(
            L.T, jax.scipy.linalg.solve_triangular(L, c, lower=True),
            lower=False)
        f_new = K @ a
        diff = float(jnp.max(jnp.abs(f_new - f)))
        f = f_new
        if diff < eps:
            break
    return f, sw, L


def precompute_predictor(y, f, sw_diag, L):
    """One-time prep after fit():
         grad  = y - sigmoid(f)
         B     = sqrt_W L^{-T} L^{-1} sqrt_W
         B_aug = [B ; grad.T], zero-padded to a multiple of 8 rows, cast bf16.
       The forward then needs no solves and a single MXU matmul per tile."""
    N = L.shape[0]
    grad = (y - jax.nn.sigmoid(f)).astype(jnp.float32)                 # (N, 1)
    C = jax.scipy.linalg.solve_triangular(
        L, jnp.diagflat(sw_diag.reshape(-1)), lower=True)              # L^{-1} sqrt_W
    B = C.T @ C                                                        # (N, N)
    N_aug = _round_up(N + 1, 8)
    B_aug = jnp.zeros((N_aug, N), jnp.float32)
    B_aug = B_aug.at[:N, :].set(B).at[N, :].set(grad[:, 0])
    return B_aug.astype(jnp.bfloat16)


def forward_reference(x_test, X, y, f, sw_diag, L, ls, amp, noise):
    """Pure-JAX reference of the PyTorch forward (for sanity checking)."""
    k = _kernel_mat_ref(X, x_test, ls, amp)
    v = jax.scipy.linalg.solve_triangular(L, sw_diag * k, lower=True)
    grad = y - jax.nn.sigmoid(f)
    mu = k.T @ grad
    var = amp - jnp.diag(v.T @ v)
    z = mu + jnp.sqrt(var)[:, None] * noise.T
    pi = jax.nn.sigmoid(z).mean(-1)
    return mu, var, pi


# --------------------------------- main ---------------------------------------

if __name__ == "__main__":
    key = jax.random.PRNGKey(0)
    k1, k2, k3, k4 = jax.random.split(key, 4)

    N, M, D, n_samples = 32, 16, 8, 10

    # module parameters: length_scale_ = log(1.0), amplitude_scale_ = log(1.0)
    length_scale = float(jnp.exp(jnp.array(0.0)))
    amplitude_scale = float(jnp.exp(jnp.array(0.0)))

    X_train = jax.random.normal(k1, (N, D), dtype=jnp.float32)
    y_train = jax.random.bernoulli(k2, 0.5, (N, 1)).astype(jnp.float32)
    x_test = jax.random.normal(k3, (M, D), dtype=jnp.float32)
    # torch.randn_like(mu.repeat(1, n_samples)) -> generated as (n_samples, M)
    noise = jax.random.normal(k4, (n_samples, M), dtype=jnp.float32)

    f_hat, sw_diag, L = fit_laplace(X_train, y_train, length_scale, amplitude_scale)
    B_aug = precompute_predictor(y_train, f_hat, sw_diag, L)

    mu, var, pi = binary_laplace_gpc_forward(
        x_test, X_train, B_aug, length_scale, amplitude_scale, noise)
    jax.block_until_ready((mu, var, pi))

    # sanity check against the pure-JAX reference
    mu_r, var_r, pi_r = forward_reference(
        x_test, X_train, y_train, f_hat, sw_diag, L,
        length_scale, amplitude_scale, noise)
    assert mu.shape == (M, 1) and var.shape == (M,) and pi.shape == (M,)
    assert jnp.allclose(mu, mu_r, atol=1e-2, rtol=1e-2)
    assert jnp.allclose(var, var_r, atol=1e-2, rtol=1e-2)
    assert jnp.allclose(pi, pi_r, atol=1e-2, rtol=1e-2)

    print("KERNEL_OK")
</pallas_src>

<mosaic_0001>
module attributes {stable_mosaic.version = 11 : i64} {
  func.func @_gpc_forward_kernel(%arg0: i32, %arg1: memref<32x8xf32, #tpu.memory_space<vmem>>, %arg2: memref<8x128xf32, #tpu.memory_space<vmem>>, %arg3: memref<40x32xbf16, #tpu.memory_space<vmem>>, %arg4: memref<10x128xf32, #tpu.memory_space<vmem>>, %arg5: memref<3xf32, #tpu.memory_space<smem>>, %arg6: memref<8x128xf32, #tpu.memory_space<vmem>>) attributes {dimension_semantics = [#tpu.dimension_semantics<parallel>], iteration_bounds = array<i64: 1>, scalar_prefetch = 0 : i64, scratch_operands = 0 : i64, tpu.core_type = #tpu.core_type<tc>, window_params = [{pipeline_mode = #tpu.pipeline_mode<synchronous>, transform_indices = @transform_0, window_bounds = array<i64: 32, 8>}, {transform_indices = @transform_1, window_bounds = array<i64: 8, 128>}, {pipeline_mode = #tpu.pipeline_mode<synchronous>, transform_indices = @transform_2, window_bounds = array<i64: 40, 32>}, {transform_indices = @transform_3, window_bounds = array<i64: 10, 128>}, {transform_indices = @transform_4, window_bounds = array<i64: 3>}, {transform_indices = @transform_5, window_bounds = array<i64: 8, 128>}]} {
    %c0 = arith.constant 0 : index
    %0 = memref.load %arg5[%c0] : memref<3xf32, #tpu.memory_space<smem>>
    %c1 = arith.constant 1 : index
    %1 = memref.load %arg5[%c1] : memref<3xf32, #tpu.memory_space<smem>>
    %c2 = arith.constant 2 : index
    %2 = memref.load %arg5[%c2] : memref<3xf32, #tpu.memory_space<smem>>
    %c0_0 = arith.constant 0 : index
    %c0_1 = arith.constant 0 : index
    %3 = vector.load %arg1[%c0_0, %c0_1] : memref<32x8xf32, #tpu.memory_space<vmem>>, vector<32x8xf32>
    %c0_2 = arith.constant 0 : index
    %c0_3 = arith.constant 0 : index
    %4 = vector.load %arg2[%c0_2, %c0_3] : memref<8x128xf32, #tpu.memory_space<vmem>>, vector<8x128xf32>
    %5 = arith.mulf %3, %3 : vector<32x8xf32>
    %cst = arith.constant dense<0.000000e+00> : vector<32xf32>
    %6 = vector.multi_reduction <add>, %5, %cst [1] : vector<32x8xf32> to vector<32xf32>
    %7 = vector.shape_cast %6 : vector<32xf32> to vector<32x1xf32>
    %8 = arith.mulf %4, %4 : vector<8x128xf32>
    %cst_4 = arith.constant dense<0.000000e+00> : vector<128xf32>
    %9 = vector.multi_reduction <add>, %8, %cst_4 [0] : vector<8x128xf32> to vector<128xf32>
    %10 = vector.shape_cast %9 : vector<128xf32> to vector<1x128xf32>
    %cst_5 = arith.constant dense<0.000000e+00> : vector<32x128xf32>
    %11 = tpu.matmul %3, %4, %cst_5 {dimension_numbers = #tpu.dot_dimension_numbers<[1], [0], [0], [1], [0, 0, 1, 1], [], []>} : vector<32x8xf32>, vector<8x128xf32>, vector<32x128xf32> -> vector<32x128xf32>
    %cst_6 = arith.constant 2.000000e+00 : f32
    %12 = vector.broadcast %cst_6 : f32 to vector<32x128xf32>
    %13 = arith.mulf %12, %11 : vector<32x128xf32>
    %14 = vector.broadcast %10 : vector<1x128xf32> to vector<32x128xf32>
    %15 = arith.subf %14, %13 : vector<32x128xf32>
    %16 = vector.broadcast %7 : vector<32x1xf32> to vector<32x128xf32>
    %17 = arith.addf %15, %16 : vector<32x128xf32>
    %cst_7 = arith.constant 0.000000e+00 : f32
    %18 = vector.broadcast %cst_7 : f32 to vector<32x128xf32>
    %19 = arith.maximumf %17, %18 : vector<32x128xf32>
    %20 = vector.broadcast %0 : f32 to vector<32x128xf32>
    %21 = arith.mulf %20, %19 : vector<32x128xf32>
    %22 = vector.broadcast %1 : f32 to vector<32x128xf32>
    %23 = arith.addf %21, %22 : vector<32x128xf32>
    %24 = math.exp %23 : vector<32x128xf32>
    %c0_8 = arith.constant 0 : index
    %c0_9 = arith.constant 0 : index
    %25 = vector.load %arg3[%c0_8, %c0_9] : memref<40x32xbf16, #tpu.memory_space<vmem>>, vector<40x32xbf16>
    %26 = arith.truncf %24 : vector<32x128xf32> to vector<32x128xbf16>
    %cst_10 = arith.constant dense<0.000000e+00> : vector<40x128xf32>
    %27 = tpu.matmul %25, %26, %cst_10 {dimension_numbers = #tpu.dot_dimension_numbers<[1], [0], [0], [1], [0, 0, 1, 1], [], []>} : vector<40x32xbf16>, vector<32x128xbf16>, vector<40x128xf32> -> vector<40x128xf32>
    %28 = vector.extract_strided_slice %27 {offsets = [0, 0], sizes = [32, 128], strides = [1, 1]} : vector<40x128xf32> to vector<32x128xf32>
    %29 = vector.extract_strided_slice %27 {offsets = [32, 0], sizes = [1, 128], strides = [1, 1]} : vector<40x128xf32> to vector<1x128xf32>
    %30 = arith.mulf %24, %28 : vector<32x128xf32>
    %cst_11 = arith.constant dense<0.000000e+00> : vector<128xf32>
    %31 = vector.multi_reduction <add>, %30, %cst_11 [0] : vector<32x128xf32> to vector<128xf32>
    %32 = vector.shape_cast %31 : vector<128xf32> to vector<1x128xf32>
    %33 = vector.broadcast %2 : f32 to vector<1x128xf32>
    %34 = arith.subf %33, %32 : vector<1x128xf32>
    %cst_12 = arith.constant 0.000000e+00 : f32
    %35 = vector.broadcast %cst_12 : f32 to vector<1x128xf32>
    %36 = arith.maximumf %34, %35 : vector<1x128xf32>
    %37 = math.sqrt %36 : vector<1x128xf32>
    %c0_13 = arith.constant 0 : index
    %c0_14 = arith.constant 0 : index
    %38 = vector.load %arg4[%c0_13, %c0_14] : memref<10x128xf32, #tpu.memory_space<vmem>>, vector<10x128xf32>
    %39 = vector.broadcast %37 : vector<1x128xf32> to vector<10x128xf32>
    %40 = arith.mulf %39, %38 : vector<10x128xf32>
    %41 = vector.broadcast %29 : vector<1x128xf32> to vector<10x128xf32>
    %42 = arith.addf %41, %40 : vector<10x128xf32>
    %cst_15 = arith.constant 5.000000e-01 : f32
    %43 = vector.broadcast %cst_15 : f32 to vector<10x128xf32>
    %44 = arith.mulf %43, %42 : vector<10x128xf32>
    %45 = math.tanh %44 : vector<10x128xf32>
    %cst_16 = arith.constant 1.000000e+00 : f32
    %46 = vector.broadcast %cst_16 : f32 to vector<10x128xf32>
    %47 = arith.addf %45, %46 : vector<10x128xf32>
    %cst_17 = arith.constant 5.000000e-01 : f32
    %48 = vector.broadcast %cst_17 : f32 to vector<10x128xf32>
    %49 = arith.mulf %48, %47 : vector<10x128xf32>
    %cst_18 = arith.constant dense<0.000000e+00> : vector<128xf32>
    %50 = vector.multi_reduction <add>, %49, %cst_18 [0] : vector<10x128xf32> to vector<128xf32>
    %51 = vector.shape_cast %50 : vector<128xf32> to vector<1x128xf32>
    %cst_19 = arith.constant 1.000000e+01 : f32
    %52 = vector.broadcast %cst_19 : f32 to vector<1x128xf32>
    %53 = arith.divf %51, %52 : vector<1x128xf32>
    %54 = tpu.iota {dimensions = array<i32: 0>} : vector<8x128xi32>
    %c0_i32 = arith.constant 0 : i32
    %55 = vector.broadcast %c0_i32 : i32 to vector<8x128xi32>
    %56 = arith.cmpi eq, %54, %55 : vector<8x128xi32>
    %c1_i32 = arith.constant 1 : i32
    %57 = vector.broadcast %c1_i32 : i32 to vector<8x128xi32>
    %58 = arith.cmpi eq, %54, %57 : vector<8x128xi32>
    %c2_i32 = arith.constant 2 : i32
    %59 = vector.broadcast %c2_i32 : i32 to vector<8x128xi32>
    %60 = arith.cmpi eq, %54, %59 : vector<8x128xi32>
    %cst_20 = arith.constant 0.000000e+00 : f32
    %61 = vector.shape_cast %53 : vector<1x128xf32> to vector<1x128xf32>
    %62 = vector.broadcast %61 : vector<1x128xf32> to vector<8x128xf32>
    %63 = vector.broadcast %cst_20 : f32 to vector<8x128xf32>
    %64 = arith.select %60, %62, %63 : vector<8x128xi1>, vector<8x128xf32>
    %65 = vector.shape_cast %36 : vector<1x128xf32> to vector<1x128xf32>
    %66 = vector.broadcast %65 : vector<1x128xf32> to vector<8x128xf32>
    %67 = arith.select %58, %66, %64 : vector<8x128xi1>, vector<8x128xf32>
    %68 = vector.shape_cast %29 : vector<1x128xf32> to vector<1x128xf32>
    %69 = vector.broadcast %68 : vector<1x128xf32> to vector<8x128xf32>
    %70 = arith.select %56, %69, %67 : vector<8x128xi1>, vector<8x128xf32>
    %c0_21 = arith.constant 0 : index
    %c0_22 = arith.constant 0 : index
    %71 = vector.load %arg6[%c0_21, %c0_22] : memref<8x128xf32, #tpu.memory_space<vmem>>, vector<8x128xf32>
    tpu.vector_store %arg6[%c0_21, %c0_22], %70 {strides = array<i32>} : memref<8x128xf32, #tpu.memory_space<vmem>>, vector<8x128xf32>,
    return
  }
  func.func @transform_0(%arg0: i32) -> (i32, i32) {
    %c0_i32 = arith.constant 0 : i32
    %c0_i32_0 = arith.constant 0 : i32
    %c0_i32_1 = arith.constant 0 : i32
    return %c0_i32, %c0_i32_0 : i32, i32
  }
  func.func @transform_1(%arg0: i32) -> (i32, i32) {
    %c0_i32 = arith.constant 0 : i32
    %c0_i32_0 = arith.constant 0 : i32
    return %c0_i32, %arg0 : i32, i32
  }
  func.func @transform_2(%arg0: i32) -> (i32, i32) {
    %c0_i32 = arith.constant 0 : i32
    %c0_i32_0 = arith.constant 0 : i32
    %c0_i32_1 = arith.constant 0 : i32
    return %c0_i32, %c0_i32_0 : i32, i32
  }
  func.func @transform_3(%arg0: i32) -> (i32, i32) {
    %c0_i32 = arith.constant 0 : i32
    %c0_i32_0 = arith.constant 0 : i32
    return %c0_i32, %arg0 : i32, i32
  }
  func.func @transform_4(%arg0: i32) -> i32 {
    %c0_i32 = arith.constant 0 : i32
    %c0_i32_0 = arith.constant 0 : i32
    return %c0_i32 : i32
  }
  func.func @transform_5(%arg0: i32) -> (i32, i32) {
    %c0_i32 = arith.constant 0 : i32
    %c0_i32_0 = arith.constant 0 : i32
    return %c0_i32, %arg0 : i32, i32
  }
}

module attributes {stable_mosaic.version = 11 : i64} {
  func.func @_gpc_forward_kernel(%arg0: i32, %arg1: memref<32x8xf32, #tpu.memory_space<vmem>>, %arg2: memref<8x128xf32, #tpu.memory_space<vmem>>, %arg3: memref<40x32xbf16, #tpu.memory_space<vmem>>, %arg4: memref<10x128xf32, #tpu.memory_space<vmem>>, %arg5: memref<3xf32, #tpu.memory_space<smem>>, %arg6: memref<8x128xf32, #tpu.memory_space<vmem>>) attributes {dimension_semantics = [#tpu.dimension_semantics<parallel>], iteration_bounds = array<i64: 1>, scalar_prefetch = 0 : i64, scratch_operands = 0 : i64, tpu.core_type = #tpu.core_type<tc>, window_params = [{pipeline_mode = #tpu.pipeline_mode<synchronous>, transform_indices = @transform_0, window_bounds = array<i64: 32, 8>}, {transform_indices = @transform_1, window_bounds = array<i64: 8, 128>}, {pipeline_mode = #tpu.pipeline_mode<synchronous>, transform_indices = @transform_2, window_bounds = array<i64: 40, 32>}, {transform_indices = @transform_3, window_bounds = array<i64: 10, 128>}, {transform_indices = @transform_4, window_bounds = array<i64: 3>}, {transform_indices = @transform_5, window_bounds = array<i64: 8, 128>}]} {
    %c0 = arith.constant 0 : index
    %0 = memref.load %arg5[%c0] : memref<3xf32, #tpu.memory_space<smem>>
    %c1 = arith.constant 1 : index
    %1 = memref.load %arg5[%c1] : memref<3xf32, #tpu.memory_space<smem>>
    %c2 = arith.constant 2 : index
    %2 = memref.load %arg5[%c2] : memref<3xf32, #tpu.memory_space<smem>>
    %c0_0 = arith.constant 0 : index
    %c0_1 = arith.constant 0 : index
    %3 = vector.load %arg1[%c0_0, %c0_1] : memref<32x8xf32, #tpu.memory_space<vmem>>, vector<32x8xf32>
    %c0_2 = arith.constant 0 : index
    %c0_3 = arith.constant 0 : index
    %4 = vector.load %arg2[%c0_2, %c0_3] : memref<8x128xf32, #tpu.memory_space<vmem>>, vector<8x128xf32>
    %5 = arith.mulf %3, %3 : vector<32x8xf32>
    %cst = arith.constant dense<0.000000e+00> : vector<32xf32>
    %6 = vector.multi_reduction <add>, %5, %cst [1] : vector<32x8xf32> to vector<32xf32>
    %7 = vector.shape_cast %6 : vector<32xf32> to vector<32x1xf32>
    %8 = arith.mulf %4, %4 : vector<8x128xf32>
    %cst_4 = arith.constant dense<0.000000e+00> : vector<128xf32>
    %9 = vector.multi_reduction <add>, %8, %cst_4 [0] : vector<8x128xf32> to vector<128xf32>
    %10 = vector.shape_cast %9 : vector<128xf32> to vector<1x128xf32>
    %cst_5 = arith.constant dense<0.000000e+00> : vector<32x128xf32>
    %11 = tpu.matmul %3, %4, %cst_5 {dimension_numbers = #tpu.dot_dimension_numbers<[1], [0], [0], [1], [0, 0, 1, 1], [], []>} : vector<32x8xf32>, vector<8x128xf32>, vector<32x128xf32> -> vector<32x128xf32>
    %cst_6 = arith.constant 2.000000e+00 : f32
    %12 = vector.broadcast %cst_6 : f32 to vector<32x128xf32>
    %13 = arith.mulf %12, %11 : vector<32x128xf32>
    %14 = vector.broadcast %10 : vector<1x128xf32> to vector<32x128xf32>
    %15 = arith.subf %14, %13 : vector<32x128xf32>
    %16 = vector.broadcast %7 : vector<32x1xf32> to vector<32x128xf32>
    %17 = arith.addf %15, %16 : vector<32x128xf32>
    %cst_7 = arith.constant 0.000000e+00 : f32
    %18 = vector.broadcast %cst_7 : f32 to vector<32x128xf32>
    %19 = arith.maximumf %17, %18 : vector<32x128xf32>
    %20 = vector.broadcast %0 : f32 to vector<32x128xf32>
    %21 = arith.mulf %20, %19 : vector<32x128xf32>
    %22 = vector.broadcast %1 : f32 to vector<32x128xf32>
    %23 = arith.addf %21, %22 : vector<32x128xf32>
    %24 = math.exp %23 : vector<32x128xf32>
    %c0_8 = arith.constant 0 : index
    %c0_9 = arith.constant 0 : index
    %25 = vector.load %arg3[%c0_8, %c0_9] : memref<40x32xbf16, #tpu.memory_space<vmem>>, vector<40x32xbf16>
    %26 = arith.truncf %24 : vector<32x128xf32> to vector<32x128xbf16>
    %cst_10 = arith.constant dense<0.000000e+00> : vector<40x128xf32>
    %27 = tpu.matmul %25, %26, %cst_10 {dimension_numbers = #tpu.dot_dimension_numbers<[1], [0], [0], [1], [0, 0, 1, 1], [], []>} : vector<40x32xbf16>, vector<32x128xbf16>, vector<40x128xf32> -> vector<40x128xf32>
    %28 = vector.extract_strided_slice %27 {offsets = [0, 0], sizes = [32, 128], strides = [1, 1]} : vector<40x128xf32> to vector<32x128xf32>
    %29 = vector.extract_strided_slice %27 {offsets = [32, 0], sizes = [1, 128], strides = [1, 1]} : vector<40x128xf32> to vector<1x128xf32>
    %30 = arith.mulf %24, %28 : vector<32x128xf32>
    %cst_11 = arith.constant dense<0.000000e+00> : vector<128xf32>
    %31 = vector.multi_reduction <add>, %30, %cst_11 [0] : vector<32x128xf32> to vector<128xf32>
    %32 = vector.shape_cast %31 : vector<128xf32> to vector<1x128xf32>
    %33 = vector.broadcast %2 : f32 to vector<1x128xf32>
    %34 = arith.subf %33, %32 : vector<1x128xf32>
    %cst_12 = arith.constant 0.000000e+00 : f32
    %35 = vector.broadcast %cst_12 : f32 to vector<1x128xf32>
    %36 = arith.maximumf %34, %35 : vector<1x128xf32>
    %37 = math.sqrt %36 : vector<1x128xf32>
    %c0_13 = arith.constant 0 : index
    %c0_14 = arith.constant 0 : index
    %38 = vector.load %arg4[%c0_13, %c0_14] : memref<10x128xf32, #tpu.memory_space<vmem>>, vector<10x128xf32>
    %39 = vector.broadcast %37 : vector<1x128xf32> to vector<10x128xf32>
    %40 = arith.mulf %39, %38 : vector<10x128xf32>
    %41 = vector.broadcast %29 : vector<1x128xf32> to vector<10x128xf32>
    %42 = arith.addf %41, %40 : vector<10x128xf32>
    %cst_15 = arith.constant 5.000000e-01 : f32
    %43 = vector.broadcast %cst_15 : f32 to vector<10x128xf32>
    %44 = arith.mulf %43, %42 : vector<10x128xf32>
    %45 = math.tanh %44 : vector<10x128xf32>
    %cst_16 = arith.constant 1.000000e+00 : f32
    %46 = vector.broadcast %cst_16 : f32 to vector<10x128xf32>
    %47 = arith.addf %45, %46 : vector<10x128xf32>
    %cst_17 = arith.constant 5.000000e-01 : f32
    %48 = vector.broadcast %cst_17 : f32 to vector<10x128xf32>
    %49 = arith.mulf %48, %47 : vector<10x128xf32>
    %cst_18 = arith.constant dense<0.000000e+00> : vector<128xf32>
    %50 = vector.multi_reduction <add>, %49, %cst_18 [0] : vector<10x128xf32> to vector<128xf32>
    %51 = vector.shape_cast %50 : vector<128xf32> to vector<1x128xf32>
    %cst_19 = arith.constant 1.000000e+01 : f32
    %52 = vector.broadcast %cst_19 : f32 to vector<1x128xf32>
    %53 = arith.divf %51, %52 : vector<1x128xf32>
    %54 = tpu.iota {dimensions = array<i32: 0>} : vector<8x128xi32>
    %c0_i32 = arith.constant 0 : i32
    %55 = vector.broadcast %c0_i32 : i32 to vector<8x128xi32>
    %56 = arith.cmpi eq, %54, %55 : vector<8x128xi32>
    %c1_i32 = arith.constant 1 : i32
    %57 = vector.broadcast %c1_i32 : i32 to vector<8x128xi32>
    %58 = arith.cmpi eq, %54, %57 : vector<8x128xi32>
    %c2_i32 = arith.constant 2 : i32
    %59 = vector.broadcast %c2_i32 : i32 to vector<8x128xi32>
    %60 = arith.cmpi eq, %54, %59 : vector<8x128xi32>
    %cst_20 = arith.constant 0.000000e+00 : f32
    %61 = vector.shape_cast %53 : vector<1x128xf32> to vector<1x128xf32>
    %62 = vector.broadcast %61 : vector<1x128xf32> to vector<8x128xf32>
    %63 = vector.broadcast %cst_20 : f32 to vector<8x128xf32>
    %64 = arith.select %60, %62, %63 : vector<8x128xi1>, vector<8x128xf32>
    %65 = vector.shape_cast %36 : vector<1x128xf32> to vector<1x128xf32>
    %66 = vector.broadcast %65 : vector<1x128xf32> to vector<8x128xf32>
    %67 = arith.select %58, %66, %64 : vector<8x128xi1>, vector<8x128xf32>
    %68 = vector.shape_cast %29 : vector<1x128xf32> to vector<1x128xf32>
    %69 = vector.broadcast %68 : vector<1x128xf32> to vector<8x128xf32>
    %70 = arith.select %56, %69, %67 : vector<8x128xi1>, vector<8x128xf32>
    %c0_21 = arith.constant 0 : index
    %c0_22 = arith.constant 0 : index
    %71 = vector.load %arg6[%c0_21, %c0_22] : memref<8x128xf32, #tpu.memory_space<vmem>>, vector<8x128xf32>
    tpu.vector_store %arg6[%c0_21, %c0_22], %70 {strides = array<i32>} : memref<8x128xf32, #tpu.memory_space<vmem>>, vector<8x128xf32>,
    return
  }
  func.func @transform_0(%arg0: i32) -> (i32, i32) {
    %c0_i32 = arith.constant 0 : i32
    %c0_i32_0 = arith.constant 0 : i32
    %c0_i32_1 = arith.constant 0 : i32
    return %c0_i32, %c0_i32_0 : i32, i32
  }
  func.func @transform_1(%arg0: i32) -> (i32, i32) {
    %c0_i32 = arith.constant 0 : i32
    %c0_i32_0 = arith.constant 0 : i32
    return %c0_i32, %arg0 : i32, i32
  }
  func.func @transform_2(%arg0: i32) -> (i32, i32) {
    %c0_i32 = arith.constant 0 : i32
    %c0_i32_0 = arith.constant 0 : i32
    %c0_i32_1 = arith.constant 0 : i32
    return %c0_i32, %c0_i32_0 : i32, i32
  }
  func.func @transform_3(%arg0: i32) -> (i32, i32) {
    %c0_i32 = arith.constant 0 : i32
    %c0_i32_0 = arith.constant 0 : i32
    return %c0_i32, %arg0 : i32, i32
  }
  func.func @transform_4(%arg0: i32) -> i32 {
    %c0_i32 = arith.constant 0 : i32
    %c0_i32_0 = arith.constant 0 : i32
    return %c0_i32 : i32
  }
  func.func @transform_5(%arg0: i32) -> (i32, i32) {
    %c0_i32 = arith.constant 0 : i32
    %c0_i32_0 = arith.constant 0 : i32
    return %c0_i32, %arg0 : i32, i32
  }
}

</mosaic_0001>

<bundles_post_ra>
// kernel: tpu_custom_call.1
= control target key start
LH: loop header
LB: loop body
LE: loop exit
PB: predicated region body
PF: predicated region fallthrough
CT: control target
= control target key end

     0   :  { %10 = vsyncpa [#allocation4], 0  ;;  %s441_s0 = inlined_call_operand.vmem [shape: f32[32,8], index: 0, kind: input, shape index: {}]   ;;  %s442_s1 = inlined_call_operand.vmem [shape: f32[8,128], index: 1, kind: input, shape index: {}]   ;;  %s443_s2 = inlined_call_operand.vmem [shape: bf16[40,32], index: 2, kind: input, shape index: {}]   ;;  %s444_s3 = inlined_call_operand.vmem [shape: f32[10,128], index: 3, kind: input, shape index: {}]   ;;  %s445_s4 = inlined_call_operand.vmem [shape: f32[3], index: 4, kind: input, shape index: {}]   ;;  %s446_s5 = inlined_call_operand.hbm [shape: f32[8,128], index: 5, kind: output, shape index: {}]  }
   0x1   :  { %11 = vsyncpa [#allocation3], 0  ;;  %s25_s20 = sshll.u32 %s445_s4, 4  ;;  %s364_s21 = smov [#allocation2]   ;;  %s26_s20 = int_to_ptr.vmem [resolvable:$true] %s25_s20 }
   0x2   :  { %28 = dma.vmem_to_smem %s26_s20, 16, %s364_s21, [#allocation4]  }
   0x3   :  { %360 = dma.done.wait [#allocation4], 16  }
   0x4   :  { %361 = vsyncadd [#allocation4], 4294967280 }
   0x5   :  { %33 = sfence }
   0x6   :  { %v42_v0 = vld [vmem:[%s442_s1] sm:$0xff]  ;;  %vm47_vm0 = vcmask 64512   ;;  %v40_v3 = vld [vmem:[%s441_s0 + $0x10] sm:$0xff]  ;;  %v41_v4 = vld [vmem:[%s441_s0 + $0x18] sm:$0xff]  ;;  %s281_s30 = sld [smem:[#allocation2 + $0x1]]  ;;  %vm162_vm1 = vcmask 261120  }
   0x7   :  { %v38_v1 = vld [vmem:[%s441_s0] sm:$0xff]  ;;  %94 = vmatpush.msra.mxu0 %v42_v0  ;;  %300 = vmatpush.msra.mxu1 %v42_v0  ;;  %v45_v5 = vmul.f32 %v40_v3, %v40_v3  ;;  %v39_v7 = vld [vmem:[%s441_s0 + $0x8] sm:$0xff]  ;;  %v46_v10 = vmul.f32 %v41_v4, %v41_v4  ;;  %v60_v13 = vmul.f32 %v42_v0, %v42_v0  ;;  %s35_s0 = sld [smem:[#allocation2]]  ;;  %v146_v60 = vld [vmem:[%s443_s2 + $0x10] sm:$0xf]  ;;  %vm238_vm4 = vcmask 1041408  }
   0x8   :  { %v43_v2 = vmul.f32 %v38_v1, %v38_v1  ;;  %283 = vmatmul.msk.f32.vlgmr.msra.gmra.mxu0 %vm47_vm0, %v38_v1  ;;  %286 = vmatmul.msk.f32.vlgmr.msra.gmra.mxu1 %vm47_vm0, %v41_v4  ;;  %v44_v9 = vmul.f32 %v39_v7, %v39_v7  ;;  %v158_v63 = vunpack.c.l.b16 %v146_v60  ;;  %s271_s19 = sshll.u32 %s446_s5, 4  ;;  %s272_s19 = int_to_ptr.hbm [resolvable:$true] %s271_s19 }
   0x9   :  { %v54_v8 = vsel %vm47_vm0, %v45_v5, 0.0  ;;  %v57_v12 = vsel %vm47_vm0, %v46_v10, 0.0  ;;  %v61_v14 = vrot.slane %v60_v13, 4 }
   0xa   :  { %v48_v6 = vsel %vm47_vm0, %v43_v2, 0.0  ;;  %55 = vadd.xlane.f32.xlu0 %v54_v8  ;;  %v51_v11 = vsel %vm47_vm0, %v44_v9, 0.0  ;;  %v298_v2 = vld [vmem:[%s443_s2] sm:$0xff]  ;;  %v161_v4 = vpack.c.b16 %v158_v63, %v158_v63 }
   0xb   :  { %49 = vadd.xlane.f32.xlu1 %v48_v6  ;;  %v62_v15 = vadd.f32 %v61_v14, %v60_v13 }
   0xc   :  { %v129_v44 = vstv %s281_s30 }
   0xd   :  { %v63_v16 = vrot.slane %v62_v15, 2  ;;  %v124_v37 = vstv %s35_s0 }
   0xf   :  { %v64_v17 = vadd.f32 %v63_v16, %v62_v15 }
  0x10   :  { %284 = vmatmul.msk.f32.gmra.mxu0 %vm47_vm0, %v39_v7 }
  0x11   :  { %v65_v19 = vrot.slane %v64_v17, 1 }
  0x12   :  { %58 = vadd.xlane.f32.xlu0 %v57_v12 }
  0x13   :  { %52 = vadd.xlane.f32.xlu1 %v51_v11  ;;  %v66_v24 = vadd.f32 %v65_v19, %v64_v17 }
  0x18   :  { %285 = vmatmul.msk.f32.gmra.mxu0 %vm47_vm0, %v40_v3  ;;  %v299_v3 = vld [vmem:[%s443_s2 + $0x8] sm:$0xff]  ;;  %s282_s2 = sld [smem:[#allocation2 + $0x2]] }
  0x7d   :  { %v56_v18 = vpop.xlane.xlu0 %55 }
  0x7e   :  { %v50_v21 = vpop.xlane.xlu1 %49 }
  0x85   :  { %v96_v20 = vpop.f32.mrf.mxu0  ;;  %v105_v22 = vpop.f32.mrf.mxu1 }
  0x86   :  { %v111_v23 = vmul.f32 2.0, %v105_v22  ;;  %v59_v26 = vpop.xlane.xlu0 %58  ;;  %v108_v27 = vmul.f32 2.0, %v96_v20  ;;  %v53_v31 = vpop.xlane.xlu1 %52 }
  0x88   :  { %v115_v25 = vsub.f32 %v66_v24, %v111_v23  ;;  %v112_v32 = vsub.f32 %v66_v24, %v108_v27  ;;  %v208_v23 = vstv %s282_s2 }
  0x8a   :  { %v119_v30 = vadd.f32 %v115_v25, %v59_v26  ;;  %v116_v36 = vadd.f32 %v112_v32, %v50_v21 }
  0x8c   :  { %v123_v35 = vmax.f32 %v119_v30, 0.0  ;;  %v120_v42 = vmax.f32 %v116_v36, 0.0  ;;  %v224_v36 = vld [vmem:[%s444_s3 + $0x8] sm:$0x3] }
  0x8d   :  { %v99_v28 = vpop.f32.mrf.mxu0 }
  0x8e   :  { %v109_v29 = vmul.f32 2.0, %v99_v28  ;;  %v128_v41 = vmul.f32 %v124_v37, %v123_v35  ;;  %v125_v48 = vmul.f32 %v124_v37, %v120_v42  ;;  %v223_v35 = vld [vmem:[%s444_s3] sm:$0xff]  ;;  %s366_s3 = smov [#allocation5]  }
  0x8f   :  { %s269_s16 = sshll.u32 %s366_s3, 4  ;;  %s270_s16 = int_to_ptr.vmem [resolvable:$true] %s269_s16 }
  0x90   :  { %v113_v33 = vsub.f32 %v66_v24, %v109_v29  ;;  %v133_v47 = vadd.f32 %v129_v44, %v128_v41  ;;  %v130_v53 = vadd.f32 %v129_v44, %v125_v48 }
  0x92   :  { %v117_v34 = vadd.f32 %v113_v33, %v53_v31  ;;  %v140_v52 = vmul.f32 1.442695, %v133_v47  ;;  %v134_v57 = vmul.f32 1.442695, %v130_v53 }
  0x94   :  { %v121_v39 = vmax.f32 %v117_v34, 0.0  ;;  %308 = vpow2.f32 %v140_v52 }
  0x95   :  { %v102_v38 = vpop.f32.mrf.mxu0 }
  0x96   :  { %v110_v40 = vmul.f32 2.0, %v102_v38  ;;  %v126_v45 = vmul.f32 %v124_v37, %v121_v39 }
  0x98   :  { %v114_v43 = vsub.f32 %v66_v24, %v110_v40  ;;  %v131_v50 = vadd.f32 %v129_v44, %v126_v45 }
  0x9a   :  { %v118_v46 = vadd.f32 %v114_v43, %v56_v18  ;;  %v136_v55 = vmul.f32 1.442695, %v131_v50  ;;  %v309_v58 = vpop.eup %308 }
  0x9c   :  { %v122_v49 = vmax.f32 %v118_v46, 0.0  ;;  %v365_v46 = vmov 10.0  }
  0x9e   :  { %v127_v51 = vmul.f32 %v124_v37, %v122_v49 }
  0xa0   :  { %v132_v54 = vadd.f32 %v129_v44, %v127_v51 }
  0xa2   :  { %v138_v56 = vmul.f32 1.442695, %v132_v54 }
  0xa4   :  { %310 = vpow2.f32 %v138_v56 }
  0xa5   :  { %312 = vpow2.f32 %v136_v55 }
  0xa6   :  { %314 = vpow2.f32 %v134_v57 }
  0xaa   :  { %v311_v59 = vpop.eup %310 }
  0xab   :  { %v148_v61 = vpack.c.bf16 %v309_v58, %v311_v59  ;;  %v313_v62 = vpop.eup %312 }
  0xac   :  { %v315_v0 = vpop.eup %314 }
  0xad   :  { %178 = vmatpush.bf16.msrb.mxu1 %v148_v61  ;;  %301 = vmatpush.bf16.msra.mxu2 %v148_v61  ;;  %v147_v1 = vpack.c.bf16 %v313_v62, %v315_v0 }
  0xae   :  { %302 = vmatpush.bf16.msra.mxu3 %v148_v61  ;;  %v255_v61 = vlaneseq }
  0xb1   :  { %179 = vmatpush.bf16.msrb.mxu1 %v147_v1  ;;  %303 = vmatpush.bf16.msra.mxu2 %v147_v1 }
  0xb2   :  { %304 = vmatpush.bf16.msra.mxu3 %v147_v1  ;;  %v256_v1 = vshrl.u32 %v255_v61, 7 }
  0xb4   :  { %295 = vmatmul.msk.bf16.vlgmr.msrb.gmra.mxu1 %vm162_vm1, %v298_v2  ;;  %296 = vmatmul.msk.bf16.vlgmr.msra.gmra.mxu2 %vm162_vm1, %v299_v3  ;;  %vm259_vm6 = vcmp.eq.s32.totalorder %v256_v1, 2  ;;  %vm258_vm7 = vcmp.eq.s32.totalorder %v256_v1, 1  ;;  %vm257_vm8 = vcmp.eq.s32.totalorder %v256_v1, 0 }
  0xb5   :  { %297 = vmatmul.msk.bf16.vlgmr.msra.gmra.mxu3 %vm162_vm1, %v161_v4 }
 0x131   :  { %v181_v5 = vpop.f32.mrf.mxu1 }
 0x132   :  { %v195_v9 = vmul.f32 %v315_v0, %v181_v5 }
 0x137   :  { %v186_v6 = vpop.f32.mrf.mxu2 }
 0x138   :  { %v191_v7 = vpop.f32.mrf.mxu3  ;;  %v197_v12 = vmul.f32 %v311_v59, %v186_v6 }
 0x139   :  { %v183_v8 = vpop.f32.mrf.mxu1  ;;  %v227_v38 = vperm.slane %v191_v7, 0 }
 0x13a   :  { %v196_v10 = vmul.f32 %v313_v62, %v183_v8 }
 0x13c   :  { %v199_v11 = vadd.f32 %v196_v10, %v195_v9 }
 0x13e   :  { %v200_v15 = vadd.f32 %v199_v11, %v197_v12 }
 0x13f   :  { %v188_v13 = vpop.f32.mrf.mxu2 }
 0x140   :  { %v198_v14 = vmul.f32 %v309_v58, %v188_v13  ;;  %v193_v16 = vpop.f32.mrf.mxu3 }
 0x142   :  { %v201_v17 = vadd.f32 %v200_v15, %v198_v14 }
 0x144   :  { %v202_v18 = vrot.slane %v201_v17, 4 }
 0x146   :  { %v203_v19 = vadd.f32 %v202_v18, %v201_v17 }
 0x148   :  { %v204_v20 = vrot.slane %v203_v19, 2 }
 0x14a   :  { %v205_v21 = vadd.f32 %v204_v20, %v203_v19 }
 0x14c   :  { %v206_v22 = vrot.slane %v205_v21, 1 }
 0x14e   :  { %v207_v24 = vadd.f32 %v206_v22, %v205_v21 }
 0x150   :  { %v209_v25 = vsub.f32 %v208_v23, %v207_v24 }
 0x152   :  { %v210_v26 = vmax.f32 %v209_v25, 0.0 }
 0x154   :  { %316 = vrsqrt.f32 %v210_v26  ;;  %vm218_vm2 = vcmp.eq.f32.partialorder %v210_v26, inf  ;;  %v221_v34 = vand.u32 2147483648, %v210_v26  ;;  %vm220_vm3 = vcmp.eq.f32.partialorder %v210_v26, 0.0 }
 0x155   :  { %318 = vrcp.f32 %v365_v46 }
 0x15a   :  { %v317_v27 = vpop.eup %316 }
 0x15b   :  { %v212_v28 = vmul.f32 %v317_v27, %v210_v26  ;;  %v319_v47 = vpop.eup %318 }
 0x15c   :  { %v248_v52 = vmul.f32 10.0, %v319_v47  ;;  %vm252_vm5 = vweird.f32 %v319_v47 }
 0x15d   :  { %v213_v29 = vmul.f32 %v317_v27, %v212_v28 }
 0x15e   :  { %v249_v56 = vsub.f32 1.0, %v248_v52 }
 0x15f   :  { %v214_v30 = vmul.f32 0.5, %v213_v29 }
 0x160   :  { %v250_v59 = vmul.f32 %v319_v47, %v249_v56 }
 0x161   :  { %v215_v31 = vsub.f32 1.5, %v214_v30 }
 0x162   :  { %v251_v63 = vadd.f32 %v319_v47, %v250_v59 }
 0x163   :  { %v216_v32 = vmul.f32 %v317_v27, %v215_v31 }
 0x164   :  { %v253_v3 = vsel %vm252_vm5, %v319_v47, %v251_v63 }
 0x165   :  { %v217_v33 = vmul.f32 %v216_v32, %v210_v26 }
 0x167   :  { %v219_v37 = vsel %vm218_vm2, %v210_v26, %v217_v33 }
 0x168   :  { %v222_v39 = vsel %vm220_vm3, %v221_v34, %v219_v37 }
 0x169   :  { %v225_v40 = vmul.f32 %v223_v35, %v222_v39  ;;  %v226_v41 = vmul.f32 %v224_v36, %v222_v39 }
 0x16b   :  { %v228_v42 = vadd.f32 %v227_v38, %v225_v40  ;;  %v229_v43 = vadd.f32 %v227_v38, %v226_v41 }
 0x16d   :  { %v230_v44 = vmul.f32 0.5, %v228_v42  ;;  %v231_v45 = vmul.f32 0.5, %v229_v43 }
 0x16f   :  { %320 = vtanh.f32 %v230_v44 }
 0x170   :  { %322 = vtanh.f32 %v231_v45 }
 0x175   :  { %v321_v48 = vpop.eup %320 }
 0x176   :  { %v323_v49 = vpop.eup %322  ;;  %v234_v50 = vadd.f32 1.0, %v321_v48 }
 0x177   :  { %v235_v51 = vadd.f32 1.0, %v323_v49 }
 0x178   :  { %v236_v53 = vmul.f32 0.5, %v234_v50 }
 0x179   :  { %v237_v54 = vmul.f32 0.5, %v235_v51 }
 0x17b   :  { %v239_v55 = vsel %vm238_vm4, %v237_v54, 0.0 }
 0x17c   :  { %v240_v57 = vadd.f32 %v239_v55, %v236_v53 }
 0x17e   :  { %v241_v58 = vrot.slane %v240_v57, 4 }
 0x180   :  { %v242_v60 = vadd.f32 %v241_v58, %v240_v57 }
 0x182   :  { %v243_v62 = vrot.slane %v242_v60, 2 }
 0x184   :  { %v244_v0 = vadd.f32 %v243_v62, %v242_v60 }
 0x186   :  { %v245_v2 = vrot.slane %v244_v0, 1 }
 0x188   :  { %v246_v4 = vadd.f32 %v245_v2, %v244_v0 }
 0x18a   :  { %v254_v5 = vmul.f32 %v253_v3, %v246_v4 }
 0x18c   :  { %v260_v6 = vsel %vm259_vm6, %v254_v5, 0.0 }
 0x18d   :  { %v261_v7 = vsel %vm258_vm7, %v210_v26, %v260_v6 }
 0x18e   :  { %v262_v8 = vsel %vm257_vm8, %v227_v38, %v261_v7 }
 0x18f   :  { %263 = vst [vmem:[#allocation5] sm:$0xff] %v262_v8 }
 0x190   :  { %274 = dma.vmem_to_hbm [thread:$0]  %s270_s16, 128, %s272_s19, [#allocation3]  }
 0x191   :  { %362 = dma.done.wait [#allocation3], 128  }
 0x192   :  { %363 = vsyncadd [#allocation3], 4294967168 }
 0x193   :  { %279 = vsyncpa [#allocation3], 1 }
 0x194   :  { %280 = vsyncpa [#allocation4], 1 }

// kernel: tpu_custom_call.1
= control target key start
LH: loop header
LB: loop body
LE: loop exit
PB: predicated region body
PF: predicated region fallthrough
CT: control target
= control target key end

     0   :  { %10 = vsyncpa [#allocation4], 0  ;;  %s441_s0 = inlined_call_operand.vmem [shape: f32[32,8], index: 0, kind: input, shape index: {}]   ;;  %s442_s1 = inlined_call_operand.vmem [shape: f32[8,128], index: 1, kind: input, shape index: {}]   ;;  %s443_s2 = inlined_call_operand.vmem [shape: bf16[40,32], index: 2, kind: input, shape index: {}]   ;;  %s444_s3 = inlined_call_operand.vmem [shape: f32[10,128], index: 3, kind: input, shape index: {}]   ;;  %s445_s4 = inlined_call_operand.vmem [shape: f32[3], index: 4, kind: input, shape index: {}]   ;;  %s446_s5 = inlined_call_operand.hbm [shape: f32[8,128], index: 5, kind: output, shape index: {}]  }
   0x1   :  { %11 = vsyncpa [#allocation3], 0  ;;  %s25_s20 = sshll.u32 %s445_s4, 4  ;;  %s364_s21 = smov [#allocation2]   ;;  %s26_s20 = int_to_ptr.vmem [resolvable:$true] %s25_s20 }
   0x2   :  { %28 = dma.vmem_to_smem %s26_s20, 16, %s364_s21, [#allocation4]  }
   0x3   :  { %360 = dma.done.wait [#allocation4], 16  }
   0x4   :  { %361 = vsyncadd [#allocation4], 4294967280 }
   0x5   :  { %33 = sfence }
   0x6   :  { %v42_v0 = vld [vmem:[%s442_s1] sm:$0xff]  ;;  %vm47_vm0 = vcmask 64512   ;;  %v40_v3 = vld [vmem:[%s441_s0 + $0x10] sm:$0xff]  ;;  %v41_v4 = vld [vmem:[%s441_s0 + $0x18] sm:$0xff]  ;;  %s281_s30 = sld [smem:[#allocation2 + $0x1]]  ;;  %vm162_vm1 = vcmask 261120  }
   0x7   :  { %v38_v1 = vld [vmem:[%s441_s0] sm:$0xff]  ;;  %94 = vmatpush.msra.mxu0 %v42_v0  ;;  %300 = vmatpush.msra.mxu1 %v42_v0  ;;  %v45_v5 = vmul.f32 %v40_v3, %v40_v3  ;;  %v39_v7 = vld [vmem:[%s441_s0 + $0x8] sm:$0xff]  ;;  %v46_v10 = vmul.f32 %v41_v4, %v41_v4  ;;  %v60_v13 = vmul.f32 %v42_v0, %v42_v0  ;;  %s35_s0 = sld [smem:[#allocation2]]  ;;  %v146_v60 = vld [vmem:[%s443_s2 + $0x10] sm:$0xf]  ;;  %vm238_vm4 = vcmask 1041408  }
   0x8   :  { %v43_v2 = vmul.f32 %v38_v1, %v38_v1  ;;  %283 = vmatmul.msk.f32.vlgmr.msra.gmra.mxu0 %vm47_vm0, %v38_v1  ;;  %286 = vmatmul.msk.f32.vlgmr.msra.gmra.mxu1 %vm47_vm0, %v41_v4  ;;  %v44_v9 = vmul.f32 %v39_v7, %v39_v7  ;;  %v158_v63 = vunpack.c.l.b16 %v146_v60  ;;  %s271_s19 = sshll.u32 %s446_s5, 4  ;;  %s272_s19 = int_to_ptr.hbm [resolvable:$true] %s271_s19 }
   0x9   :  { %v54_v8 = vsel %vm47_vm0, %v45_v5, 0.0  ;;  %v57_v12 = vsel %vm47_vm0, %v46_v10, 0.0  ;;  %v61_v14 = vrot.slane %v60_v13, 4 }
   0xa   :  { %v48_v6 = vsel %vm47_vm0, %v43_v2, 0.0  ;;  %55 = vadd.xlane.f32.xlu0 %v54_v8  ;;  %v51_v11 = vsel %vm47_vm0, %v44_v9, 0.0  ;;  %v298_v2 = vld [vmem:[%s443_s2] sm:$0xff]  ;;  %v161_v4 = vpack.c.b16 %v158_v63, %v158_v63 }
   0xb   :  { %49 = vadd.xlane.f32.xlu1 %v48_v6  ;;  %v62_v15 = vadd.f32 %v61_v14, %v60_v13 }
   0xc   :  { %v129_v44 = vstv %s281_s30 }
   0xd   :  { %v63_v16 = vrot.slane %v62_v15, 2  ;;  %v124_v37 = vstv %s35_s0 }
   0xf   :  { %v64_v17 = vadd.f32 %v63_v16, %v62_v15 }
  0x10   :  { %284 = vmatmul.msk.f32.gmra.mxu0 %vm47_vm0, %v39_v7 }
  0x11   :  { %v65_v19 = vrot.slane %v64_v17, 1 }
  0x12   :  { %58 = vadd.xlane.f32.xlu0 %v57_v12 }
  0x13   :  { %52 = vadd.xlane.f32.xlu1 %v51_v11  ;;  %v66_v24 = vadd.f32 %v65_v19, %v64_v17 }
  0x18   :  { %285 = vmatmul.msk.f32.gmra.mxu0 %vm47_vm0, %v40_v3  ;;  %v299_v3 = vld [vmem:[%s443_s2 + $0x8] sm:$0xff]  ;;  %s282_s2 = sld [smem:[#allocation2 + $0x2]] }
  0x7d   :  { %v56_v18 = vpop.xlane.xlu0 %55 }
  0x7e   :  { %v50_v21 = vpop.xlane.xlu1 %49 }
  0x85   :  { %v96_v20 = vpop.f32.mrf.mxu0  ;;  %v105_v22 = vpop.f32.mrf.mxu1 }
  0x86   :  { %v111_v23 = vmul.f32 2.0, %v105_v22  ;;  %v59_v26 = vpop.xlane.xlu0 %58  ;;  %v108_v27 = vmul.f32 2.0, %v96_v20  ;;  %v53_v31 = vpop.xlane.xlu1 %52 }
  0x88   :  { %v115_v25 = vsub.f32 %v66_v24, %v111_v23  ;;  %v112_v32 = vsub.f32 %v66_v24, %v108_v27  ;;  %v208_v23 = vstv %s282_s2 }
  0x8a   :  { %v119_v30 = vadd.f32 %v115_v25, %v59_v26  ;;  %v116_v36 = vadd.f32 %v112_v32, %v50_v21 }
  0x8c   :  { %v123_v35 = vmax.f32 %v119_v30, 0.0  ;;  %v120_v42 = vmax.f32 %v116_v36, 0.0  ;;  %v224_v36 = vld [vmem:[%s444_s3 + $0x8] sm:$0x3] }
  0x8d   :  { %v99_v28 = vpop.f32.mrf.mxu0 }
  0x8e   :  { %v109_v29 = vmul.f32 2.0, %v99_v28  ;;  %v128_v41 = vmul.f32 %v124_v37, %v123_v35  ;;  %v125_v48 = vmul.f32 %v124_v37, %v120_v42  ;;  %v223_v35 = vld [vmem:[%s444_s3] sm:$0xff]  ;;  %s366_s3 = smov [#allocation5]  }
  0x8f   :  { %s269_s16 = sshll.u32 %s366_s3, 4  ;;  %s270_s16 = int_to_ptr.vmem [resolvable:$true] %s269_s16 }
  0x90   :  { %v113_v33 = vsub.f32 %v66_v24, %v109_v29  ;;  %v133_v47 = vadd.f32 %v129_v44, %v128_v41  ;;  %v130_v53 = vadd.f32 %v129_v44, %v125_v48 }
  0x92   :  { %v117_v34 = vadd.f32 %v113_v33, %v53_v31  ;;  %v140_v52 = vmul.f32 1.442695, %v133_v47  ;;  %v134_v57 = vmul.f32 1.442695, %v130_v53 }
  0x94   :  { %v121_v39 = vmax.f32 %v117_v34, 0.0  ;;  %308 = vpow2.f32 %v140_v52 }
  0x95   :  { %v102_v38 = vpop.f32.mrf.mxu0 }
  0x96   :  { %v110_v40 = vmul.f32 2.0, %v102_v38  ;;  %v126_v45 = vmul.f32 %v124_v37, %v121_v39 }
  0x98   :  { %v114_v43 = vsub.f32 %v66_v24, %v110_v40  ;;  %v131_v50 = vadd.f32 %v129_v44, %v126_v45 }
  0x9a   :  { %v118_v46 = vadd.f32 %v114_v43, %v56_v18  ;;  %v136_v55 = vmul.f32 1.442695, %v131_v50  ;;  %v309_v58 = vpop.eup %308 }
  0x9c   :  { %v122_v49 = vmax.f32 %v118_v46, 0.0  ;;  %v365_v46 = vmov 10.0  }
  0x9e   :  { %v127_v51 = vmul.f32 %v124_v37, %v122_v49 }
  0xa0   :  { %v132_v54 = vadd.f32 %v129_v44, %v127_v51 }
  0xa2   :  { %v138_v56 = vmul.f32 1.442695, %v132_v54 }
  0xa4   :  { %310 = vpow2.f32 %v138_v56 }
  0xa5   :  { %312 = vpow2.f32 %v136_v55 }
  0xa6   :  { %314 = vpow2.f32 %v134_v57 }
  0xaa   :  { %v311_v59 = vpop.eup %310 }
  0xab   :  { %v148_v61 = vpack.c.bf16 %v309_v58, %v311_v59  ;;  %v313_v62 = vpop.eup %312 }
  0xac   :  { %v315_v0 = vpop.eup %314 }
  0xad   :  { %178 = vmatpush.bf16.msrb.mxu1 %v148_v61  ;;  %301 = vmatpush.bf16.msra.mxu2 %v148_v61  ;;  %v147_v1 = vpack.c.bf16 %v313_v62, %v315_v0 }
  0xae   :  { %302 = vmatpush.bf16.msra.mxu3 %v148_v61  ;;  %v255_v61 = vlaneseq }
  0xb1   :  { %179 = vmatpush.bf16.msrb.mxu1 %v147_v1  ;;  %303 = vmatpush.bf16.msra.mxu2 %v147_v1 }
  0xb2   :  { %304 = vmatpush.bf16.msra.mxu3 %v147_v1  ;;  %v256_v1 = vshrl.u32 %v255_v61, 7 }
  0xb4   :  { %295 = vmatmul.msk.bf16.vlgmr.msrb.gmra.mxu1 %vm162_vm1, %v298_v2  ;;  %296 = vmatmul.msk.bf16.vlgmr.msra.gmra.mxu2 %vm162_vm1, %v299_v3  ;;  %vm259_vm6 = vcmp.eq.s32.totalorder %v256_v1, 2  ;;  %vm258_vm7 = vcmp.eq.s32.totalorder %v256_v1, 1  ;;  %vm257_vm8 = vcmp.eq.s32.totalorder %v256_v1, 0 }
  0xb5   :  { %297 = vmatmul.msk.bf16.vlgmr.msra.gmra.mxu3 %vm162_vm1, %v161_v4 }
 0x131   :  { %v181_v5 = vpop.f32.mrf.mxu1 }
 0x132   :  { %v195_v9 = vmul.f32 %v315_v0, %v181_v5 }
 0x137   :  { %v186_v6 = vpop.f32.mrf.mxu2 }
 0x138   :  { %v191_v7 = vpop.f32.mrf.mxu3  ;;  %v197_v12 = vmul.f32 %v311_v59, %v186_v6 }
 0x139   :  { %v183_v8 = vpop.f32.mrf.mxu1  ;;  %v227_v38 = vperm.slane %v191_v7, 0 }
 0x13a   :  { %v196_v10 = vmul.f32 %v313_v62, %v183_v8 }
 0x13c   :  { %v199_v11 = vadd.f32 %v196_v10, %v195_v9 }
 0x13e   :  { %v200_v15 = vadd.f32 %v199_v11, %v197_v12 }
 0x13f   :  { %v188_v13 = vpop.f32.mrf.mxu2 }
 0x140   :  { %v198_v14 = vmul.f32 %v309_v58, %v188_v13  ;;  %v193_v16 = vpop.f32.mrf.mxu3 }
 0x142   :  { %v201_v17 = vadd.f32 %v200_v15, %v198_v14 }
 0x144   :  { %v202_v18 = vrot.slane %v201_v17, 4 }
 0x146   :  { %v203_v19 = vadd.f32 %v202_v18, %v201_v17 }
 0x148   :  { %v204_v20 = vrot.slane %v203_v19, 2 }
 0x14a   :  { %v205_v21 = vadd.f32 %v204_v20, %v203_v19 }
 0x14c   :  { %v206_v22 = vrot.slane %v205_v21, 1 }
 0x14e   :  { %v207_v24 = vadd.f32 %v206_v22, %v205_v21 }
 0x150   :  { %v209_v25 = vsub.f32 %v208_v23, %v207_v24 }
 0x152   :  { %v210_v26 = vmax.f32 %v209_v25, 0.0 }
 0x154   :  { %316 = vrsqrt.f32 %v210_v26  ;;  %vm218_vm2 = vcmp.eq.f32.partialorder %v210_v26, inf  ;;  %v221_v34 = vand.u32 2147483648, %v210_v26  ;;  %vm220_vm3 = vcmp.eq.f32.partialorder %v210_v26, 0.0 }
 0x155   :  { %318 = vrcp.f32 %v365_v46 }
 0x15a   :  { %v317_v27 = vpop.eup %316 }
 0x15b   :  { %v212_v28 = vmul.f32 %v317_v27, %v210_v26  ;;  %v319_v47 = vpop.eup %318 }
 0x15c   :  { %v248_v52 = vmul.f32 10.0, %v319_v47  ;;  %vm252_vm5 = vweird.f32 %v319_v47 }
 0x15d   :  { %v213_v29 = vmul.f32 %v317_v27, %v212_v28 }
 0x15e   :  { %v249_v56 = vsub.f32 1.0, %v248_v52 }
 0x15f   :  { %v214_v30 = vmul.f32 0.5, %v213_v29 }
 0x160   :  { %v250_v59 = vmul.f32 %v319_v47, %v249_v56 }
 0x161   :  { %v215_v31 = vsub.f32 1.5, %v214_v30 }
 0x162   :  { %v251_v63 = vadd.f32 %v319_v47, %v250_v59 }
 0x163   :  { %v216_v32 = vmul.f32 %v317_v27, %v215_v31 }
 0x164   :  { %v253_v3 = vsel %vm252_vm5, %v319_v47, %v251_v63 }
 0x165   :  { %v217_v33 = vmul.f32 %v216_v32, %v210_v26 }
 0x167   :  { %v219_v37 = vsel %vm218_vm2, %v210_v26, %v217_v33 }
 0x168   :  { %v222_v39 = vsel %vm220_vm3, %v221_v34, %v219_v37 }
 0x169   :  { %v225_v40 = vmul.f32 %v223_v35, %v222_v39  ;;  %v226_v41 = vmul.f32 %v224_v36, %v222_v39 }
 0x16b   :  { %v228_v42 = vadd.f32 %v227_v38, %v225_v40  ;;  %v229_v43 = vadd.f32 %v227_v38, %v226_v41 }
 0x16d   :  { %v230_v44 = vmul.f32 0.5, %v228_v42  ;;  %v231_v45 = vmul.f32 0.5, %v229_v43 }
 0x16f   :  { %320 = vtanh.f32 %v230_v44 }
 0x170   :  { %322 = vtanh.f32 %v231_v45 }
 0x175   :  { %v321_v48 = vpop.eup %320 }
 0x176   :  { %v323_v49 = vpop.eup %322  ;;  %v234_v50 = vadd.f32 1.0, %v321_v48 }
 0x177   :  { %v235_v51 = vadd.f32 1.0, %v323_v49 }
 0x178   :  { %v236_v53 = vmul.f32 0.5, %v234_v50 }
 0x179   :  { %v237_v54 = vmul.f32 0.5, %v235_v51 }
 0x17b   :  { %v239_v55 = vsel %vm238_vm4, %v237_v54, 0.0 }
 0x17c   :  { %v240_v57 = vadd.f32 %v239_v55, %v236_v53 }
 0x17e   :  { %v241_v58 = vrot.slane %v240_v57, 4 }
 0x180   :  { %v242_v60 = vadd.f32 %v241_v58, %v240_v57 }
 0x182   :  { %v243_v62 = vrot.slane %v242_v60, 2 }
 0x184   :  { %v244_v0 = vadd.f32 %v243_v62, %v242_v60 }
 0x186   :  { %v245_v2 = vrot.slane %v244_v0, 1 }
 0x188   :  { %v246_v4 = vadd.f32 %v245_v2, %v244_v0 }
 0x18a   :  { %v254_v5 = vmul.f32 %v253_v3, %v246_v4 }
 0x18c   :  { %v260_v6 = vsel %vm259_vm6, %v254_v5, 0.0 }
 0x18d   :  { %v261_v7 = vsel %vm258_vm7, %v210_v26, %v260_v6 }
 0x18e   :  { %v262_v8 = vsel %vm257_vm8, %v227_v38, %v261_v7 }
 0x18f   :  { %263 = vst [vmem:[#allocation5] sm:$0xff] %v262_v8 }
 0x190   :  { %274 = dma.vmem_to_hbm [thread:$0]  %s270_s16, 128, %s272_s19, [#allocation3]  }
 0x191   :  { %362 = dma.done.wait [#allocation3], 128  }
 0x192   :  { %363 = vsyncadd [#allocation3], 4294967168 }
 0x193   :  { %279 = vsyncpa [#allocation3], 1 }
 0x194   :  { %280 = vsyncpa [#allocation4], 1 }

</bundles_post_ra>
